<compile_context>
chip_gen: v7x
topology: tpu7x:2x2x1
jax: 0.10.0
libtpu: 0.0.40
codegen_flags: <defaults>
</compile_context>

<pallas_src>
import jax
import jax.numpy as jnp
from jax.experimental import pallas as pl
from jax.experimental.pallas import tpu as pltpu

HIDDEN = 128
OUT_PAD = 8  # pad the tiny action dim up to one sublane (8), not a full 128 lanes


def actor_kernel(x_ref, w1_ref, b1_ref, w2_ref, b2_ref, o_ref):
    # x:  [tb, n_states]       w1: [n_states, hidden]   b1: [1, hidden]
    # w2: [hidden, out_pad]    b2: [1, out_pad]         o:  [tb, out_pad]
    x = x_ref[...]
    # fc1 + relu  (MXU matmul, f32 accumulation)
    h = jnp.dot(x, w1_ref[...], preferred_element_type=jnp.float32) + b1_ref[...]
    h = jnp.maximum(h, 0.0)
    # out + tanh  (padded output columns carry all-zero weights -> tanh(0)=0,
    # sliced off in the wrapper)
    y = jnp.dot(h, w2_ref[...], preferred_element_type=jnp.float32) + b2_ref[...]
    o_ref[...] = jnp.tanh(y).astype(o_ref.dtype)


def actor_forward(x, w1, b1, w2p, b2p, n_action, *, block_b=2048, gridless_cutoff=None):
    """Forward pass. w2p/b2p are the sublane-padded (OUT_PAD cols) output-layer params.

    Small batches (B <= gridless_cutoff, default block_b): single grid-less
    pallas_call, whole arrays as one VMEM block (no per-step grid overhead).
    Large batches: 1-D grid over B, marked "parallel" (megacore / v7x 2-TC
    sharding), weights resident across iterations. On v7x, pass a lower
    gridless_cutoff so mid-size batches still get >=2 grid blocks.
    """
    B, n_states = x.shape
    n_out = w2p.shape[1]  # padded to OUT_PAD

    if gridless_cutoff is None:
        gridless_cutoff = block_b

    if B <= gridless_cutoff:
        out = pl.pallas_call(
            actor_kernel,
            out_shape=jax.ShapeDtypeStruct((B, n_out), jnp.float32),
        )(x, w1, b1, w2p, b2p)
        return out[:, :n_action]

    # Batch-tiled path. No explicit padding of x: Pallas handles the ragged
    # final block itself (rows >= B in the last block are computed from
    # unspecified data and masked out of the writeback, so the output already
    # has exactly B valid rows). Do NOT remove the [:, :n_action] column slice.
    nb = pl.cdiv(B, block_b)
    out = pl.pallas_call(
        actor_kernel,
        out_shape=jax.ShapeDtypeStruct((B, n_out), jnp.float32),
        grid=(nb,),
        in_specs=[
            pl.BlockSpec((block_b, n_states), lambda i: (i, 0)),
            pl.BlockSpec((n_states, HIDDEN), lambda i: (0, 0)),   # resident
            pl.BlockSpec((1, HIDDEN), lambda i: (0, 0)),          # resident
            pl.BlockSpec((HIDDEN, n_out), lambda i: (0, 0)),      # resident
            pl.BlockSpec((1, n_out), lambda i: (0, 0)),           # resident
        ],
        out_specs=pl.BlockSpec((block_b, n_out), lambda i: (i, 0)),
        compiler_params=pltpu.CompilerParams(
            dimension_semantics=("parallel",)),
    )(x, w1, b1, w2p, b2p)
    return out[:, :n_action]


def init_params(key, n_states, n_action):
    """Deterministic synthetic init matching the module's __init__ shapes.

    PyTorch: fc1.weight ~ N(0, 0.1) with shape (hidden, n_states);
             out.weight ~ N(0, 0.1) with shape (n_action, hidden);
             biases use PyTorch's default uniform(-1/sqrt(fan_in), 1/sqrt(fan_in)).
    Weights are stored transposed ([in, out]); the output layer is zero-padded
    to OUT_PAD columns once here (not per forward call).
    """
    k1, k2, k3, k4 = jax.random.split(key, 4)
    w1 = (0.1 * jax.random.normal(k1, (HIDDEN, n_states), jnp.float32)).T  # [n_states, hidden]
    w2 = (0.1 * jax.random.normal(k2, (n_action, HIDDEN), jnp.float32)).T  # [hidden, n_action]
    bound1 = 1.0 / jnp.sqrt(jnp.float32(n_states))
    bound2 = 1.0 / jnp.sqrt(jnp.float32(HIDDEN))
    b1 = jax.random.uniform(k3, (1, HIDDEN), jnp.float32, -bound1, bound1)
    b2 = jax.random.uniform(k4, (1, n_action), jnp.float32, -bound2, bound2)

    n_pad = max(OUT_PAD, ((n_action + OUT_PAD - 1) // OUT_PAD) * OUT_PAD)
    w2p = jnp.zeros((HIDDEN, n_pad), jnp.float32).at[:, :n_action].set(w2)
    b2p = jnp.zeros((1, n_pad), jnp.float32).at[:, :n_action].set(b2)
    return w1, b1, w2p, b2p


def reference_forward(x, w1, b1, w2p, b2p, n_action):
    h = jnp.maximum(x @ w1 + b1, 0.0)
    return jnp.tanh(h @ w2p + b2p)[:, :n_action]


if __name__ == "__main__":
    # LunarLanderContinuous-v2: observation dim 8, action dim 2.
    B, n_states, n_action = 2, 8, 2

    key = jax.random.PRNGKey(0)
    kx, kp, kb = jax.random.split(key, 3)
    x = jax.random.normal(kx, (B, n_states), jnp.float32)
    w1, b1, w2p, b2p = init_params(kp, n_states, n_action)

    # Small-batch (inference / act()) path: grid-less pallas_call.
    out = actor_forward(x, w1, b1, w2p, b2p, n_action)
    out = jax.block_until_ready(out)
    ref = reference_forward(x, w1, b1, w2p, b2p, n_action)
    assert out.shape == (B, n_action)
    assert jnp.allclose(out, ref, atol=1e-4, rtol=1e-5), "mismatch vs reference (small batch)"

    # Batch-tiled path with a ragged final block (1000 = 3*256 + 232), kept
    # small so the test is fast; production default is block_b=2048.
    Bb = 1000
    xb = jax.random.normal(kb, (Bb, n_states), jnp.float32)
    outb = actor_forward(xb, w1, b1, w2p, b2p, n_action, block_b=256, gridless_cutoff=256)
    outb = jax.block_until_ready(outb)
    refb = reference_forward(xb, w1, b1, w2p, b2p, n_action)
    assert outb.shape == (Bb, n_action)
    assert jnp.allclose(outb, refb, atol=1e-4, rtol=1e-5), "mismatch vs reference (batched)"

    print("KERNEL_OK")
</pallas_src>

<mosaic_0001>
module attributes {stable_mosaic.version = 11 : i64} {
  func.func @actor_kernel(%arg0: memref<2x8xf32, #tpu.memory_space<vmem>>, %arg1: memref<8x128xf32, #tpu.memory_space<vmem>>, %arg2: memref<1x128xf32, #tpu.memory_space<vmem>>, %arg3: memref<128x8xf32, #tpu.memory_space<vmem>>, %arg4: memref<1x8xf32, #tpu.memory_space<vmem>>, %arg5: memref<2x8xf32, #tpu.memory_space<vmem>>) attributes {dimension_semantics = [], scalar_prefetch = 0 : i64, scratch_operands = 0 : i64, tpu.core_type = #tpu.core_type<tc>} {
    %c0 = arith.constant 0 : index
    %c0_0 = arith.constant 0 : index
    %0 = vector.load %arg0[%c0, %c0_0] : memref<2x8xf32, #tpu.memory_space<vmem>>, vector<2x8xf32>
    %c0_1 = arith.constant 0 : index
    %c0_2 = arith.constant 0 : index
    %1 = vector.load %arg1[%c0_1, %c0_2] : memref<8x128xf32, #tpu.memory_space<vmem>>, vector<8x128xf32>
    %cst = arith.constant dense<0.000000e+00> : vector<2x128xf32>
    %2 = tpu.matmul %0, %1, %cst {dimension_numbers = #tpu.dot_dimension_numbers<[1], [0], [0], [1], [0, 0, 1, 1], [], []>} : vector<2x8xf32>, vector<8x128xf32>, vector<2x128xf32> -> vector<2x128xf32>
    %c0_3 = arith.constant 0 : index
    %c0_4 = arith.constant 0 : index
    %3 = vector.load %arg2[%c0_3, %c0_4] : memref<1x128xf32, #tpu.memory_space<vmem>>, vector<1x128xf32>
    %4 = vector.broadcast %3 : vector<1x128xf32> to vector<2x128xf32>
    %5 = arith.addf %2, %4 : vector<2x128xf32>
    %cst_5 = arith.constant 0.000000e+00 : f32
    %6 = vector.broadcast %cst_5 : f32 to vector<2x128xf32>
    %7 = arith.maximumf %5, %6 : vector<2x128xf32>
    %c0_6 = arith.constant 0 : index
    %c0_7 = arith.constant 0 : index
    %8 = vector.load %arg3[%c0_6, %c0_7] : memref<128x8xf32, #tpu.memory_space<vmem>>, vector<128x8xf32>
    %cst_8 = arith.constant dense<0.000000e+00> : vector<2x8xf32>
    %9 = tpu.matmul %7, %8, %cst_8 {dimension_numbers = #tpu.dot_dimension_numbers<[1], [0], [0], [1], [0, 0, 1, 1], [], []>} : vector<2x128xf32>, vector<128x8xf32>, vector<2x8xf32> -> vector<2x8xf32>
    %c0_9 = arith.constant 0 : index
    %c0_10 = arith.constant 0 : index
    %10 = vector.load %arg4[%c0_9, %c0_10] : memref<1x8xf32, #tpu.memory_space<vmem>>, vector<1x8xf32>
    %11 = vector.broadcast %10 : vector<1x8xf32> to vector<2x8xf32>
    %12 = arith.addf %9, %11 : vector<2x8xf32>
    %13 = math.tanh %12 : vector<2x8xf32>
    %c0_11 = arith.constant 0 : index
    %c0_12 = arith.constant 0 : index
    %14 = vector.load %arg5[%c0_11, %c0_12] : memref<2x8xf32, #tpu.memory_space<vmem>>, vector<2x8xf32>
    tpu.vector_store %arg5[%c0_11, %c0_12], %13 {strides = array<i32>} : memref<2x8xf32, #tpu.memory_space<vmem>>, vector<2x8xf32>,
    return
  }
}

</mosaic_0001>

<bundles_post_ra>
// kernel: tpu_custom_call.1
= control target key start
LH: loop header
LB: loop body
LE: loop exit
PB: predicated region body
PF: predicated region fallthrough
CT: control target
= control target key end

     0   :  { %vm30_vm0 = vcmask 64512   ;;  %v331_v2 = vmov 0.0   ;;  %vm332_vm1 = vmmov 0   ;;  %v333_v6 = vmov 0.0|0.0   ;;  %s437_s0 = inlined_call_operand.vmem [shape: f32[2,8], index: 0, kind: input, shape index: {}]   ;;  %s438_s1 = inlined_call_operand.vmem [shape: f32[8,128], index: 1, kind: input, shape index: {}]   ;;  %s439_s2 = inlined_call_operand.vmem [shape: f32[1,128], index: 2, kind: input, shape index: {}]   ;;  %s440_s3 = inlined_call_operand.vmem [shape: f32[128,8], index: 3, kind: input, shape index: {}]   ;;  %s441_s4 = inlined_call_operand.vmem [shape: f32[1,8], index: 4, kind: input, shape index: {}]   ;;  %s442_s5 = inlined_call_operand.hbm [shape: f32[2,8], index: 5, kind: output, shape index: {}]  }
   0x1   :  { %v22_v0 = vld [vmem:[%s438_s1] sm:$0xff]  ;;  %237 = vmatprep.subr.mxu0 %v331_v2  ;;  %239 = vmatprep.mubr.msk.f32.mxu0 %vm332_vm1, %v331_v2  ;;  %v106_v4 = vld [vmem:[%s440_s3 + $0x8] sm:$0xff]  ;;  %v107_v5 = vld [vmem:[%s440_s3 + $0x10] sm:$0xff] }
   0x2   :  { %v21_v1 = vld [vmem:[%s437_s0] sm:$0x3]  ;;  %238 = vmatpush3.msra.mxu0 %v22_v0  ;;  %277 = vmatprep.subr.bf16.mxu1 %v333_v6  ;;  %v108_v8 = vld [vmem:[%s440_s3 + $0x18] sm:$0xff]  ;;  %v110_v11 = vld [vmem:[%s440_s3 + $0x28] sm:$0xff] }
   0x3   :  { %v105_v3 = vld [vmem:[%s440_s3] sm:$0xff]  ;;  %240 = vmatmul.mubr.msk.f32.vlgmr.msra.gmra.mrb[0].mxu0 %vm30_vm0, %v21_v1  ;;  %274 = vmatprep.mubr.msk.f32.mxu1 %vm332_vm1, %v331_v2  ;;  %v281_v9 = vpack.c.bf16 %v108_v8, %v107_v5 }
   0x4   :  { %v278_v7 = vpack.c.bf16 %v106_v4, %v105_v3  ;;  %v109_v10 = vld [vmem:[%s440_s3 + $0x20] sm:$0xff] }
   0x6   :  { %279 = vmatpush3.bf16.msra.mxu1 %v278_v7 }
   0x7   :  { %280 = vmatprep.subr.bf16.mxu1 %v333_v6 }
   0x8   :  { %10 = vsyncpa [#allocation3], 0  ;;  %v284_v12 = vpack.c.bf16 %v110_v11, %v109_v10  ;;  %v111_v13 = vld [vmem:[%s440_s3 + $0x30] sm:$0xff]  ;;  %v112_v14 = vld [vmem:[%s440_s3 + $0x38] sm:$0xff]  ;;  %vm199_vm2 = vcmask 58368  }
   0x9   :  { %v287_v15 = vpack.c.bf16 %v112_v14, %v111_v13  ;;  %v113_v16 = vld [vmem:[%s440_s3 + $0x40] sm:$0xff]  ;;  %v114_v17 = vld [vmem:[%s440_s3 + $0x48] sm:$0xff]  ;;  %v115_v19 = vld [vmem:[%s440_s3 + $0x50] sm:$0xff] }
   0xa   :  { %282 = vmatpush3.bf16.msra.mxu1 %v281_v9  ;;  %v290_v18 = vpack.c.bf16 %v114_v17, %v113_v16  ;;  %v116_v20 = vld [vmem:[%s440_s3 + $0x58] sm:$0xff]  ;;  %v117_v22 = vld [vmem:[%s440_s3 + $0x60] sm:$0xff]  ;;  %v118_v23 = vld [vmem:[%s440_s3 + $0x68] sm:$0xff] }
   0xb   :  { %283 = vmatprep.subr.bf16.mxu1 %v333_v6  ;;  %v293_v21 = vpack.c.bf16 %v116_v20, %v115_v19  ;;  %v296_v24 = vpack.c.bf16 %v118_v23, %v117_v22  ;;  %v119_v25 = vld [vmem:[%s440_s3 + $0x70] sm:$0xff]  ;;  %v120_v26 = vld [vmem:[%s440_s3 + $0x78] sm:$0xff]  ;;  %v215_v28 = vld [vmem:[%s439_s2] ss:$0 sm:$0xff]  ;;  %s334_s3 = smov [#allocation2]  }
   0xc   :  { %v299_v27 = vpack.c.bf16 %v120_v26, %v119_v25  ;;  %v217_v33 = vld [vmem:[%s441_s4] ss:$0 sm:$0xff]  ;;  %s207_s29 = sshll.u32 %s334_s3, 4  ;;  %s208_s29 = int_to_ptr.vmem [resolvable:$true] %s207_s29 }
   0xd   :  { %s307_s2 = scalar_lea.vmem %s208_s29, 32  ;;  %p312_p1 = scmp.lt.s32.totalorder %s208_s29, %s208_s29 }
   0xe   :  { %285 = vmatpush3.bf16.msra.mxu1 %v284_v12  ;;  %p308_p0 = scmp.ne.s32.totalorder %s208_s29, %s307_s2  ;;  %p313_p2 = scmp.lt.s32.totalorder %s307_s2, %s307_s2 }
   0xf   :  { %286 = vmatprep.subr.bf16.mxu1 %v333_v6 }
  0x10   :  { %p314_p3 = por %p313_p2, %p312_p1 }
  0x12   :  { %288 = vmatpush3.bf16.msra.mxu1 %v287_v15  ;;  %p315_p4 = pnand %p314_p3, %p308_p0 }
  0x13   :  { %289 = vmatprep.subr.bf16.mxu1 %v333_v6 }
  0x16   :  { %291 = vmatpush3.bf16.msra.mxu1 %v290_v18 }
  0x17   :  { %292 = vmatprep.subr.bf16.mxu1 %v333_v6 }
  0x1a   :  { %294 = vmatpush3.bf16.msra.mxu1 %v293_v21 }
  0x1b   :  { %295 = vmatprep.subr.bf16.mxu1 %v333_v6 }
  0x1e   :  { %297 = vmatpush3.bf16.msra.mxu1 %v296_v24 }
  0x1f   :  { %298 = vmatprep.subr.bf16.mxu1 %v333_v6 }
  0x22   :  { %300 = vmatpush3.bf16.msra.mxu1 %v299_v27 }
  0xd6   :  { %v100_v29 = vpop.f32.mrb[0].mxu0 }
  0xd7   :  { %v101_v30 = vadd.f32 %v215_v28, %v100_v29  ;;  %v241_v31 = vpop.f32.mrb[1].mxu0 }
  0xd9   :  { %v104_v32 = vmax.f32 %v101_v30, 0.0 }
  0xdb   :  { %275 = vmatmul.mubr.f32.vlgmr.msra.gmra.mrb[0].mxu1 %v104_v32 }
 0x1ae   :  { %v194_v34 = vpop.f32.mrb[0].mxu1 }
 0x1af   :  { %v195_v35 = vadd.f32 %v217_v33, %v194_v34  ;;  %v276_v36 = vpop.f32.mrb[1].mxu1 }
 0x1b1   :  { %305 = vtanh.f32 %v195_v35 }
 0x1bb   :  { %v306_v37 = vpop.eup %305 }
 0x1bc   :  { %200 = vst.msk [vmem:[#allocation2] sm:$0x3] %vm199_vm2, %v306_v37 }
 0x1bd   :  { %318 = shalt.err (!%p315_p4)
}
 0x1be   :  { %s319_s4 = scalar_lea.hbm %s442_s5, 32 }
 0x1bf   :  { %p320_p5 = scmp.ne.s32.totalorder %s442_s5, %s319_s4  ;;  %p323_p6 = scmp.lt.u32.totalorder %s319_s4, %s442_s5 }
 0x1c1   :  { %p325_p7 = pnand %p323_p6, %p320_p5 }
 0x1c3   :  { %328 = shalt.err (!%p325_p7)
}
 0x1c4   :  { %210 = dma.vmem_to_hbm [thread:$0]  %s208_s29, 32, %s442_s5, [#allocation3]  }
 0x1c5   :  { %329 = dma.done.wait [#allocation3], 32  }
 0x1c6   :  { %330 = vsyncadd [#allocation3], 4294967264 }
 0x1c7   :  { %214 = vsyncpa [#allocation3], 1 }

</bundles_post_ra>
